<compile_context>
chip_gen: v7x
topology: tpu7x:2x2x1
jax: 0.10.0
libtpu: 0.0.40
codegen_flags: <defaults>
</compile_context>

<pallas_src>
import functools
import math

import jax
import jax.numpy as jnp
from jax.experimental import pallas as pl
from jax.experimental.pallas import tpu as pltpu

TM_MAX = 256                     # row-tile upper bound (fills the 256-wide MXU on v6e/v7x)
VMEM_LIMIT = 48 * 1024 * 1024    # scoped-VMEM budget; <= ~48 MiB stays safe on v7x (64 MiB)
RBF_BINS = 16
RBF_D_MIN, RBF_D_MAX = 2.0, 22.0
RBF_SIGMA = (RBF_D_MAX - RBF_D_MIN) / RBF_BINS


def _round_up(x, m):
    return ((x + m - 1) // m) * m


def _pad_rows(x, mp):
    m = x.shape[0]
    if m == mp:
        return x
    pad = [(0, mp - m)] + [(0, 0)] * (x.ndim - 1)
    return jnp.pad(x, pad)


def _choose_tm(m, bytes_per_row, tm_max=TM_MAX, vmem_budget=VMEM_LIMIT):
    """Pick a row tile: fits double-buffered tiles in VMEM, >=2 grid steps (v7x megacore)."""
    cap = max(8, (vmem_budget // max(1, 2 * bytes_per_row)) // 8 * 8)
    mp8 = _round_up(max(m, 1), 8)
    tm = min(tm_max, cap, mp8)
    if mp8 > 8 and mp8 // tm < 2:      # make sure both v7x TensorCores get a step
        tm = max(8, _round_up(mp8 // 2, 8))
    mp = _round_up(m, tm)
    return tm, mp


# ----------------------------------------------------------------------------
# Kernel 1: fused node embedding
#   node_emb = (node_feature @ W + b + node_time) * rigid_mask
# ----------------------------------------------------------------------------
def _node_embed_kernel(nf_ref, w_ref, b_ref, t_ref, m_ref, o_ref):
    h = jnp.dot(nf_ref[...], w_ref[...], preferred_element_type=jnp.float32)
    o_ref[...] = (h + b_ref[...] + t_ref[...]) * m_ref[...]


def pallas_node_embed(nf_bf16, w_bf16, bias, node_time, rigid_mask, *, tm):
    mp, nf_dim = nf_bf16.shape
    c_n = w_bf16.shape[1]
    return pl.pallas_call(
        _node_embed_kernel,
        out_shape=jax.ShapeDtypeStruct((mp, c_n), jnp.float32),
        grid=(mp // tm,),
        in_specs=[
            pl.BlockSpec((tm, nf_dim), lambda i: (i, 0)),
            pl.BlockSpec((nf_dim, c_n), lambda i: (0, 0)),
            pl.BlockSpec((1, c_n), lambda i: (0, 0)),
            pl.BlockSpec((tm, c_n), lambda i: (i, 0)),
            pl.BlockSpec((tm, 1), lambda i: (i, 0)),
        ],
        out_specs=pl.BlockSpec((tm, c_n), lambda i: (i, 0)),
        compiler_params=pltpu.CompilerParams(
            dimension_semantics=("parallel",),
            vmem_limit_bytes=VMEM_LIMIT),
    )(nf_bf16, w_bf16, bias, node_time, rigid_mask)


# ----------------------------------------------------------------------------
# Kernel 2: fused pair embedding (PairEmbedder input linear)
#   pair_feature = concat[rbf(distance_e), nf_i, nf_j, relpos]  (never materialized)
#   pair_emb = (pair_feature @ W_pair + b) * pair_mask_e
# ----------------------------------------------------------------------------
def _pair_embed_kernel(dist_ref, mu_ref, nfi_ref, nfj_ref, rel_ref, mask_ref,
                       wrbf_ref, wnfi_ref, wnfj_ref, wrel_ref, b_ref, o_ref,
                       *, K, NF, R, CZ):
    tm = dist_ref.shape[0]

    # query-row node-feature contribution: identical for all K neighbors,
    # so it is computed once per row (hoisted out of the K axis) and broadcast.
    row = jnp.dot(nfi_ref[...], wnfi_ref[...], preferred_element_type=jnp.float32)  # [TM, CZ]

    # neighbor node-feature + relpos contributions (lane-dense bf16 tiles).
    nfj = nfj_ref[...].reshape(tm * K, NF)
    acc = jnp.dot(nfj, wnfj_ref[...], preferred_element_type=jnp.float32)            # [TM*K, CZ]
    rel = rel_ref[...].reshape(tm * K, R)
    acc = acc + jnp.dot(rel, wrel_ref[...], preferred_element_type=jnp.float32)

    # RBF expansion computed in-kernel (EUP exp) — [M, K, 16] never hits HBM.
    d = dist_ref[...].reshape(tm * K, 1)
    z = (d - mu_ref[...]) * (1.0 / RBF_SIGMA)
    rbf = jnp.exp(-(z * z))                                                          # [TM*K, 16]
    acc = acc + jnp.dot(rbf.astype(jnp.bfloat16), wrbf_ref[...],
                        preferred_element_type=jnp.float32)

    out = acc.reshape(tm, K, CZ) + row[:, None, :] + b_ref[...].reshape(1, 1, CZ)
    out = out * mask_ref[...][:, :, None]
    o_ref[...] = out.reshape(tm, K * CZ)        # lane-dense flattened output


def pallas_pair_embed(dist, rbf_mu, nfi_bf16, nfj_bf16, rel_bf16, pair_mask_e,
                      w_rbf, w_nfi, w_nfj, w_rel, bias, *, tm, K, NF, R, CZ):
    mp = dist.shape[0]
    kernel = functools.partial(_pair_embed_kernel, K=K, NF=NF, R=R, CZ=CZ)
    return pl.pallas_call(
        kernel,
        out_shape=jax.ShapeDtypeStruct((mp, K * CZ), jnp.float32),
        grid=(mp // tm,),
        in_specs=[
            pl.BlockSpec((tm, K), lambda i: (i, 0)),
            pl.BlockSpec((1, RBF_BINS), lambda i: (0, 0)),
            pl.BlockSpec((tm, NF), lambda i: (i, 0)),
            pl.BlockSpec((tm, K * NF), lambda i: (i, 0)),
            pl.BlockSpec((tm, K * R), lambda i: (i, 0)),
            pl.BlockSpec((tm, K), lambda i: (i, 0)),
            pl.BlockSpec((RBF_BINS, CZ), lambda i: (0, 0)),
            pl.BlockSpec((NF, CZ), lambda i: (0, 0)),
            pl.BlockSpec((NF, CZ), lambda i: (0, 0)),
            pl.BlockSpec((R, CZ), lambda i: (0, 0)),
            pl.BlockSpec((1, CZ), lambda i: (0, 0)),
        ],
        out_specs=pl.BlockSpec((tm, K * CZ), lambda i: (i, 0)),
        compiler_params=pltpu.CompilerParams(
            dimension_semantics=("parallel",),
            vmem_limit_bytes=VMEM_LIMIT),
    )(dist, rbf_mu, nfi_bf16, nfj_bf16, rel_bf16, pair_mask_e,
      w_rbf, w_nfi, w_nfj, w_rel, bias)


# ----------------------------------------------------------------------------
# Host-side JAX glue (cheap / data-dependent ops)
# ----------------------------------------------------------------------------
def get_timestep_embedding(timesteps, embedding_dim, max_positions=10000):
    assert timesteps.ndim == 1 and embedding_dim % 2 == 0
    half = embedding_dim // 2
    emb = math.log(max_positions) / (half - 1)
    emb = jnp.exp(jnp.arange(half, dtype=jnp.float32) * -emb)
    emb = timesteps.astype(jnp.float32)[:, None] * emb[None, :]
    return jnp.concatenate([jnp.sin(emb), jnp.cos(emb)], axis=1)


def relpos_table(seq_len, relpos_k, edge_type):
    """Batch-independent [N_rigid, N_rigid, no_bins + edge_type] relpos features."""
    res_idx = jnp.repeat(jnp.arange(seq_len), 5)                 # [N]
    d = res_idx[None, :] - res_idx[:, None]                      # d[i,j] = res_j - res_i
    boundaries = jnp.arange(-relpos_k, relpos_k + 1)
    same_res = d == 0
    bin_idx = jnp.argmin(jnp.abs(d[..., None] - boundaries), axis=-1)
    d_oh = jax.nn.one_hot(bin_idx, boundaries.shape[0], dtype=jnp.float32)
    rr_idx = jnp.tile(jnp.arange(5), seq_len)                    # [N]
    re = rr_idx[None, :] - rr_idx[:, None]
    re = re * same_res + 5 * (~same_res) + jnp.abs(jnp.min(re))
    re_oh = jax.nn.one_hot(re, edge_type, dtype=jnp.float32)
    return jnp.concatenate([d_oh, re_oh], axis=-1)               # [N, N, R]


def init_params(key, nf_dim, c_n, c_z, relpos_dim):
    ks = jax.random.split(key, 5)
    w = lambda k, shp, s=0.05: s * jax.random.normal(k, shp, jnp.float32)
    return dict(
        W_node=w(ks[0], (nf_dim, c_n)),
        b_node=jnp.zeros((1, c_n), jnp.float32),
        W_rbf=w(ks[1], (RBF_BINS, c_z)),
        W_nfi=w(ks[2], (nf_dim, c_z)),
        W_nfj=w(ks[3], (nf_dim, c_z)),
        W_rel=w(ks[4], (relpos_dim, c_z)),
        b_pair=jnp.zeros((1, c_z), jnp.float32),
    )


def input_embedder_forward(params, seq_esm, rigid_type, rigid_property, distance,
                           rigid_mask, pair_mask, E_idx, sigma,
                           *, c_n, c_z, relpos_k, edge_type,
                           sigma_min=0.01 * math.pi, sigma_max=math.pi):
    B, seq_len, _ = seq_esm.shape
    N = rigid_mask.shape[1]                    # n_rigid = 5 * seq_len
    K = E_idx.shape[-1]
    M = B * N

    # ---- node features ------------------------------------------------------
    flat_rt = rigid_type.reshape(B, -1, rigid_type.shape[-1]).astype(jnp.float32)
    flat_rp = rigid_property.reshape(B, -1, rigid_property.shape[-1]).astype(jnp.float32)
    expand_seq = jnp.repeat(seq_esm.astype(jnp.float32), 5, axis=1)
    node_feature = jnp.concatenate([expand_seq, flat_rt, flat_rp], axis=-1)
    nf_dim = node_feature.shape[-1]

    # ---- diffusion-time embedding (tiny, host side) --------------------------
    diff_flag = jnp.tile(jnp.array([False, True, True, True, True]), (seq_len,))
    diff_half = jnp.broadcast_to(diff_flag[None, :, None], (B, N, c_n // 2))
    mask_f = diff_half.astype(jnp.float32)
    mask_time = jnp.concatenate([jnp.sin(mask_f), jnp.cos(mask_f)], axis=-1)
    node_sigma = jnp.log(sigma / sigma_min) / math.log(sigma_max / sigma_min) * 10000.0
    node_time = jnp.tile(get_timestep_embedding(node_sigma, c_n)[:, None, :], (1, N, 1))
    node_time = jnp.where(jnp.concatenate([diff_half, diff_half], axis=-1),
                          node_time, mask_time)

    # ---- neighbor gathers (host JAX; data-dependent E_idx) -------------------
    # TODO(synk): replace with in-kernel DMA gather (scalar-prefetched E_idx).
    distance_e = jnp.take_along_axis(distance, E_idx, axis=2)                 # [B,N,K]
    pair_mask_e = jnp.take_along_axis(pair_mask, E_idx, axis=2)               # [B,N,K]
    nf_j = jax.vmap(lambda nf, ix: nf[ix])(node_feature, E_idx)               # [B,N,K,nf]
    rel_tab = relpos_table(seq_len, relpos_k, edge_type)                      # [N,N,R]
    R = rel_tab.shape[-1]
    rel_e = jax.vmap(lambda ix: jnp.take_along_axis(rel_tab, ix[..., None], axis=1))(E_idx)

    # ---- flatten rows, pick tile, pad ----------------------------------------
    bytes_per_row = (2 * nf_dim + 8 * c_n + 4                    # node kernel tile
                     + 8 * K + 2 * nf_dim + 2 * K * nf_dim
                     + 2 * K * R + 4 * K * c_z)                  # pair kernel tile
    tm, mp = _choose_tm(M, bytes_per_row)
    pad = lambda t: _pad_rows(t, mp)

    nf_flat = pad(node_feature.reshape(M, nf_dim).astype(jnp.bfloat16))
    time_flat = pad(node_time.reshape(M, c_n).astype(jnp.float32))
    rmask_flat = pad(rigid_mask.reshape(M, 1).astype(jnp.float32))

    # ---- Kernel 1: fused node embedding --------------------------------------
    node_out = pallas_node_embed(
        nf_flat, params["W_node"].astype(jnp.bfloat16), params["b_node"],
        time_flat, rmask_flat, tm=tm)

    # ---- Kernel 2: fused pair-feature construction + pair linear -------------
    dist_flat = pad(distance_e.reshape(M, K).astype(jnp.float32))
    pmask_flat = pad(pair_mask_e.reshape(M, K).astype(jnp.float32))
    nfj_flat = pad(nf_j.reshape(M, K * nf_dim).astype(jnp.bfloat16))
    rel_flat = pad(rel_e.reshape(M, K * R).astype(jnp.bfloat16))
    rbf_mu = jnp.linspace(RBF_D_MIN, RBF_D_MAX, RBF_BINS, dtype=jnp.float32).reshape(1, RBF_BINS)

    pair_out = pallas_pair_embed(
        dist_flat, rbf_mu, nf_flat, nfj_flat, rel_flat, pmask_flat,
        params["W_rbf"].astype(jnp.bfloat16), params["W_nfi"].astype(jnp.bfloat16),
        params["W_nfj"].astype(jnp.bfloat16), params["W_rel"].astype(jnp.bfloat16),
        params["b_pair"], tm=tm, K=K, NF=nf_dim, R=R, CZ=c_z)

    node_emb = node_out[:M].reshape(B, N, c_n)
    pair_emb = pair_out[:M].reshape(B, N, K, c_z)
    return node_emb, pair_emb, pair_mask_e


# ----------------------------------------------------------------------------
if __name__ == "__main__":
    B, seq_len, K = 2, 8, 4
    esm_dim, rt_dim, rp_dim = 16, 8, 4
    c_n, c_z = 32, 16
    relpos_k, edge_type = 3, 10
    N = seq_len * 5                      # n_rigid = 40
    nf_dim = esm_dim + rt_dim + rp_dim
    relpos_dim = (2 * relpos_k + 1) + edge_type

    key = jax.random.PRNGKey(0)
    kp, k1, k2, k3, k4, k5, k6 = jax.random.split(key, 7)

    params = init_params(kp, nf_dim, c_n, c_z, relpos_dim)

    seq_esm = jax.random.normal(k1, (B, seq_len, esm_dim), jnp.float32)
    rigid_type = jax.nn.one_hot(
        jax.random.randint(k2, (B, seq_len, 5), 0, rt_dim), rt_dim, dtype=jnp.float32)
    rigid_property = jax.random.uniform(k3, (B, seq_len, 5, rp_dim), jnp.float32)
    distance = jnp.abs(jax.random.normal(k4, (B, N, N), jnp.float32)) * 10.0
    rigid_mask = jnp.ones((B, N), jnp.float32)
    pair_mask = jnp.ones((B, N, N), jnp.float32)
    E_idx = jax.random.randint(k5, (B, N, K), 0, N, jnp.int32)
    sigma = jax.random.uniform(k6, (B,), jnp.float32, minval=0.1, maxval=3.0)

    node_emb, pair_emb, pair_mask_e = input_embedder_forward(
        params, seq_esm, rigid_type, rigid_property, distance,
        rigid_mask, pair_mask, E_idx, sigma,
        c_n=c_n, c_z=c_z, relpos_k=relpos_k, edge_type=edge_type)

    node_emb = jax.block_until_ready(node_emb)
    pair_emb = jax.block_until_ready(pair_emb)
    pair_mask_e = jax.block_until_ready(pair_mask_e)

    assert node_emb.shape == (B, N, c_n)
    assert pair_emb.shape == (B, N, K, c_z)
    assert pair_mask_e.shape == (B, N, K)
    assert bool(jnp.all(jnp.isfinite(node_emb)))
    assert bool(jnp.all(jnp.isfinite(pair_emb)))
    print("KERNEL_OK")
</pallas_src>

<mosaic_0001>
module attributes {stable_mosaic.version = 11 : i64} {
  func.func @_node_embed_kernel(%arg0: i32, %arg1: memref<40x28xbf16, #tpu.memory_space<vmem>>, %arg2: memref<28x32xbf16, #tpu.memory_space<vmem>>, %arg3: memref<1x32xf32, #tpu.memory_space<vmem>>, %arg4: memref<40x32xf32, #tpu.memory_space<vmem>>, %arg5: memref<40x1xf32, #tpu.memory_space<vmem>>, %arg6: memref<40x32xf32, #tpu.memory_space<vmem>>) attributes {dimension_semantics = [#tpu.dimension_semantics<parallel>], iteration_bounds = array<i64: 2>, scalar_prefetch = 0 : i64, scratch_operands = 0 : i64, tpu.core_type = #tpu.core_type<tc>, window_params = [{transform_indices = @transform_0, window_bounds = array<i64: 40, 28>}, {pipeline_mode = #tpu.pipeline_mode<synchronous>, transform_indices = @transform_1, window_bounds = array<i64: 28, 32>}, {pipeline_mode = #tpu.pipeline_mode<synchronous>, transform_indices = @transform_2, window_bounds = array<i64: 1, 32>}, {transform_indices = @transform_3, window_bounds = array<i64: 40, 32>}, {transform_indices = @transform_4, window_bounds = array<i64: 40, 1>}, {transform_indices = @transform_5, window_bounds = array<i64: 40, 32>}]} {
    %c0 = arith.constant 0 : index
    %c0_0 = arith.constant 0 : index
    %0 = vector.load %arg1[%c0, %c0_0] : memref<40x28xbf16, #tpu.memory_space<vmem>>, vector<40x28xbf16>
    %c0_1 = arith.constant 0 : index
    %c0_2 = arith.constant 0 : index
    %1 = vector.load %arg2[%c0_1, %c0_2] : memref<28x32xbf16, #tpu.memory_space<vmem>>, vector<28x32xbf16>
    %cst = arith.constant dense<0.000000e+00> : vector<40x32xf32>
    %2 = tpu.matmul %0, %1, %cst {dimension_numbers = #tpu.dot_dimension_numbers<[1], [0], [0], [1], [0, 0, 1, 1], [], []>} : vector<40x28xbf16>, vector<28x32xbf16>, vector<40x32xf32> -> vector<40x32xf32>
    %c0_3 = arith.constant 0 : index
    %c0_4 = arith.constant 0 : index
    %3 = vector.load %arg3[%c0_3, %c0_4] : memref<1x32xf32, #tpu.memory_space<vmem>>, vector<1x32xf32>
    %4 = vector.broadcast %3 : vector<1x32xf32> to vector<40x32xf32>
    %5 = arith.addf %2, %4 : vector<40x32xf32>
    %c0_5 = arith.constant 0 : index
    %c0_6 = arith.constant 0 : index
    %6 = vector.load %arg4[%c0_5, %c0_6] : memref<40x32xf32, #tpu.memory_space<vmem>>, vector<40x32xf32>
    %7 = arith.addf %5, %6 : vector<40x32xf32>
    %c0_7 = arith.constant 0 : index
    %c0_8 = arith.constant 0 : index
    %8 = vector.load %arg5[%c0_7, %c0_8] : memref<40x1xf32, #tpu.memory_space<vmem>>, vector<40x1xf32>
    %9 = vector.broadcast %8 : vector<40x1xf32> to vector<40x32xf32>
    %10 = arith.mulf %7, %9 : vector<40x32xf32>
    %c0_9 = arith.constant 0 : index
    %c0_10 = arith.constant 0 : index
    %11 = vector.load %arg6[%c0_9, %c0_10] : memref<40x32xf32, #tpu.memory_space<vmem>>, vector<40x32xf32>
    tpu.vector_store %arg6[%c0_9, %c0_10], %10 {strides = array<i32>} : memref<40x32xf32, #tpu.memory_space<vmem>>, vector<40x32xf32>,
    return
  }
  func.func @transform_0(%arg0: i32) -> (i32, i32) {
    %c0_i32 = arith.constant 0 : i32
    %c0_i32_0 = arith.constant 0 : i32
    return %arg0, %c0_i32 : i32, i32
  }
  func.func @transform_1(%arg0: i32) -> (i32, i32) {
    %c0_i32 = arith.constant 0 : i32
    %c0_i32_0 = arith.constant 0 : i32
    %c0_i32_1 = arith.constant 0 : i32
    return %c0_i32, %c0_i32_0 : i32, i32
  }
  func.func @transform_2(%arg0: i32) -> (i32, i32) {
    %c0_i32 = arith.constant 0 : i32
    %c0_i32_0 = arith.constant 0 : i32
    %c0_i32_1 = arith.constant 0 : i32
    return %c0_i32, %c0_i32_0 : i32, i32
  }
  func.func @transform_3(%arg0: i32) -> (i32, i32) {
    %c0_i32 = arith.constant 0 : i32
    %c0_i32_0 = arith.constant 0 : i32
    return %arg0, %c0_i32 : i32, i32
  }
  func.func @transform_4(%arg0: i32) -> (i32, i32) {
    %c0_i32 = arith.constant 0 : i32
    %c0_i32_0 = arith.constant 0 : i32
    return %arg0, %c0_i32 : i32, i32
  }
  func.func @transform_5(%arg0: i32) -> (i32, i32) {
    %c0_i32 = arith.constant 0 : i32
    %c0_i32_0 = arith.constant 0 : i32
    return %arg0, %c0_i32 : i32, i32
  }
}

</mosaic_0001>

<bundles_post_ra>
// kernel: tpu_custom_call.1
= control target key start
LH: loop header
LB: loop body
LE: loop exit
PB: predicated region body
PF: predicated region fallthrough
CT: control target
= control target key end

     0   :  { %s618_s18 = smov 0   ;;  %s673_s0 = inlined_call_operand.vmem [shape: bf16[80,28], index: 0, kind: input, shape index: {}]   ;;  %s674_s1 = inlined_call_operand.vmem [shape: bf16[28,32], index: 1, kind: input, shape index: {}]   ;;  %s675_s2 = inlined_call_operand.vmem [shape: f32[1,32], index: 2, kind: input, shape index: {}]   ;;  %s676_s3 = inlined_call_operand.vmem [shape: f32[80,32], index: 3, kind: input, shape index: {}]   ;;  %s677_s4 = inlined_call_operand.vmem [shape: f32[80,1], index: 4, kind: input, shape index: {}]   ;;  %s678_s5 = inlined_call_operand.vmem [shape: f32[80,32], index: 5, kind: output, shape index: {}]  }
   0x1 LB: > { %s514_s19 = sadd.s32 4294967295, %s583_s18   ;;  %p518_p0 = scmp.ge.s32.totalorder %s583_s18, 1  ;;  %s583_s18 = sphi %s618_s18, %s15_s18  }
   0x2   : > { %p210_p1 = scmp.lt.s32.totalorder %s583_s18, 3 }
   0x4   : > { %p211_p2 = pnand %p518_p0, %p210_p1 }
   0x5   : > { %v572_v0 = vld [vmem:[%s674_s1] sm:$0xff] (!%p211_p2)   ;;  %v585_v1 = vmov (!%p211_p2), 0.0   ;;  %v573_v2 = vld [vmem:[%s674_s1 + $0x8] sm:$0x3f] (!%p211_p2)   ;;  %vm323_vm0 = vcmask (!%p211_p2), 1045504   ;;  %s248_s24 = smul.u32 (!%p211_p2), 5, %s514_s19 }
   0x6   : > { %214 = sbr.rel (%p211_p2) target bundleno = 244 (0xf4), region = 40  ;;  %539 = vmatprep.subr.bf16.mxu0 (!%p211_p2), %v585_v1  ;;  %555 = vmatprep.subr.bf16.mxu1 (!%p211_p2), %v585_v1  ;;  %v325_v3 = vsel (!%p211_p2), %vm323_vm0, %v573_v2, 0  ;;  %vm586_vm1 = vmmov (!%p211_p2), 0   ;;  %v587_v4 = vmov (!%p211_p2), 0   ;;  %vm313_vm2 = vcmask (!%p211_p2), 228352  }
   0x7   : > { %540 = vmatpush3.bf16.msra.mxu0 (!%p211_p2), %v572_v0  ;;  %557 = vmatpush3.bf16.msra.mxu1 (!%p211_p2), %v572_v0  ;;  %p249_p3 = scmp.lt.s32.totalorder (!%p211_p2), %s248_s24, 9  ;;  %v523_v13 = vld [vmem:[%s675_s2] ss:$0 sm:$0xff] (!%p211_p2)  ;;  %vm428_vm3 = vcmask (!%p211_p2), 261120  }
   0x8   : > { %541 = vmatprep.subr.bf16.mxu0 (!%p211_p2), %v585_v1  ;;  %556 = vmatprep.subr.bf16.mxu1 (!%p211_p2), %v585_v1 }
   0x9   : > { %543 = vmatprep.mubr.msk.bf16.mxu0 (!%p211_p2), %vm586_vm1, %v585_v1  ;;  %547 = vmatprep.mubr.msk.bf16.mxu1 (!%p211_p2), %vm586_vm1, %v585_v1 }
   0xa   : > { %570 = vset.pattern.permute.xlu0 (!%p211_p2), %v587_v4  ;;  %571 = vset.pattern.permute.xlu1 (!%p211_p2), %v587_v4 }
   0xb   : > { %542 = vmatpush3.bf16.msra.mxu0 (!%p211_p2), %v325_v3  ;;  %558 = vmatpush3.bf16.msra.mxu1 (!%p211_p2), %v325_v3 }
   0xd   : > { %s680_s24 = smov (!%p249_p3, %s248_s24), 9 }
   0xe   : > { %s519_s25 = sshll.u32 %s680_s24, 2  ;;  %s634_s26 = sshll.u32 %s680_s24, 3 }
   0xf   : > { %s252_s29 = scalar_lea.vmem %s673_s0, %s519_s25  ;;  %s264_s7 = scalar_lea.vmem %s677_s4, %s634_s26 }
  0x10   : > { %v574_v5 = vld [vmem:[%s252_s29] sm:$0xff]   ;;  %v575_v6 = vld [vmem:[%s252_s29 + $0x8] sm:$0xff]   ;;  %v395_v8 = vld [vmem:[%s264_s7 + $0x10] sm:$0xff]  ;;  %s651_s10 = scalar_lea.vmem %s676_s3, %s634_s26  ;;  %s270_s15 = scalar_lea.vmem %s678_s5, %s634_s26 }
  0x11   : > { %544 = vmatmul.mubr.msk.bf16.vlgmr.msra.gmra.mrb[0].mxu0 %vm313_vm2, %v574_v5  ;;  %v393_v7 = vld [vmem:[%s264_s7] sm:$0xff]  ;;  %548 = vmatmul.mubr.msk.bf16.vlgmr.msra.gmra.mrb[0].mxu1 %vm313_vm2, %v575_v6  ;;  %v394_v9 = vld [vmem:[%s264_s7 + $0x8] sm:$0xff]  ;;  %v396_v10 = vld [vmem:[%s264_s7 + $0x18] sm:$0xff] }
  0x12   : > { %400 = vperm.xlu0 %570, %v393_v7   ;;  %551 = vmatprep.mubr.msk.bf16.mxu1 %vm586_vm1, %v585_v1  ;;  %v576_v11 = vld [vmem:[%s252_s29 + $0x10] ss:$0 sps:$4 sm:$0xff]   ;;  %v397_v12 = vld [vmem:[%s264_s7 + $0x20] sm:$0xff]  ;;  %v384_v25 = vld [vmem:[%s651_s10 + $0x8] sm:$0xff] }
  0x13   : > { %410 = vperm.xlu1 %571, %v395_v8   ;;  %v383_v17 = vld [vmem:[%s651_s10] sm:$0xff]  ;;  %v385_v21 = vld [vmem:[%s651_s10 + $0x10] sm:$0xff]  ;;  %v386_v29 = vld [vmem:[%s651_s10 + $0x18] sm:$0xff] }
  0x14   : > { %v387_v43 = vld [vmem:[%s651_s10 + $0x20] sm:$0xff] }
  0x16   : > { %405 = vperm.xlu0 %570, %v394_v9  }
  0x17   : > { %415 = vperm.xlu1 %571, %v396_v10  }
  0x19   : > { %552 = vmatmul.mubr.msk.bf16.gmra.mrb[4].mxu1 %vm313_vm2, %v576_v11 }
  0x1a   : > { %420 = vperm.xlu0 %570, %v397_v12  }
  0x91   : > { %v401_v15 = vpop.permute.xlu0 %400 }
  0x92   : > { %v411_v14 = vpop.permute.xlu1 %410 }
  0x95   : > { %v406_v37 = vpop.permute.xlu0 %405 }
  0x96   : > { %v416_v36 = vpop.permute.xlu1 %415 }
  0x99   : > { %v421_v49 = vpop.permute.xlu0 %420 }
  0xe4   : > { %v361_v16 = vpop.f32.mrb[0].mxu0  ;;  %v369_v19 = vpop.f32.mrb[0].mxu1 }
  0xe5   : > { %v362_v18 = vadd.f32 %v523_v13, %v361_v16  ;;  %v545_v20 = vpop.f32.mrb[1].mxu0  ;;  %v370_v22 = vadd.f32 %v523_v13, %v369_v19  ;;  %v549_v23 = vpop.f32.mrb[1].mxu1 }
  0xe6   : > { %v364_v24 = vpop.f32.mrb[2].mxu0  ;;  %v372_v28 = vpop.f32.mrb[2].mxu1 }
  0xe7   : > { %v388_v26 = vadd.f32 %v383_v17, %v362_v18  ;;  %v365_v27 = vadd.f32 %v523_v13, %v364_v24  ;;  %v546_v30 = vpop.f32.mrb[3].mxu0  ;;  %v390_v31 = vadd.f32 %v385_v21, %v370_v22  ;;  %v373_v32 = vadd.f32 %v523_v13, %v372_v28  ;;  %v550_v33 = vpop.f32.mrb[3].mxu1 }
  0xe9   : > { %v423_v34 = vmul.f32 %v401_v15, %v388_v26  ;;  %v389_v35 = vadd.f32 %v384_v25, %v365_v27  ;;  %v425_v38 = vmul.f32 %v411_v14, %v390_v31  ;;  %v391_v39 = vadd.f32 %v386_v29, %v373_v32 }
  0xeb   : > { %429 = vst.msk [vmem:[%s270_s15] sm:$0xff] %vm428_vm3, %v423_v34  ;;  %v424_v40 = vmul.f32 %v406_v37, %v389_v35  ;;  %431 = vst.msk [vmem:[%s270_s15 + $0x10] sm:$0xff] %vm428_vm3, %v425_v38  ;;  %v426_v41 = vmul.f32 %v416_v36, %v391_v39 }
  0xec   : > { %v377_v42 = vpop.f32.mrb[4].mxu1 }
  0xed   : > { %430 = vst.msk [vmem:[%s270_s15 + $0x8] sm:$0xff] %vm428_vm3, %v424_v40  ;;  %432 = vst.msk [vmem:[%s270_s15 + $0x18] sm:$0xff] %vm428_vm3, %v426_v41  ;;  %v378_v44 = vadd.f32 %v523_v13, %v377_v42  ;;  %v553_v45 = vpop.f32.mrb[5].mxu1 }
  0xee   : > { %v380_v46 = vpop.f32.mrb[6].mxu1 }
  0xef   : > { %v392_v47 = vadd.f32 %v387_v43, %v378_v44  ;;  %v554_v48 = vpop.f32.mrb[7].mxu1 }
  0xf1   : > { %v427_v50 = vmul.f32 %v421_v49, %v392_v47 }
  0xf3   : > { %433 = vst.msk [vmem:[%s270_s15 + $0x20] sm:$0xff] %vm428_vm3, %v427_v50 }
  0xf4 PF: > { %s15_s18 = sadd.s32 1, %s583_s18  }
  0xf5   : > { %p12_p4 = scmp.ge.s32.totalorder %s15_s18, 4  }
  0xf7   :  { %14 = sbr.rel (!%p12_p4) target bundleno = 1 (0x1), region = 76 }

</bundles_post_ra>
